<compile_context>
chip_gen: v6e
topology: v6e:2x2x1
jax: 0.10.0
libtpu: 0.0.40
codegen_flags: <defaults>
</compile_context>

<pallas_src>
import functools

import jax
import jax.numpy as jnp
from jax import lax
from jax.experimental import pallas as pl
from jax.experimental.pallas import tpu as pltpu


def _accumulate(x_ref, acc_ref, *, n_full_groups, group, tail_rows, unroll):
    """acc_ref[...] += sum over the valid token rows of the current x block.

    x_ref  : (bn, t_tile, e_tile) block, native dtype
    acc_ref: (bn, group, e_tile) float32 accumulator scratch
    Valid rows = n_full_groups * group + tail_rows (all static Python ints).
    Only the (optional) final partial group is masked.
    """

    def load(j):
        off = pl.multiple_of(j * group, group)
        return x_ref[:, pl.ds(off, group), :].astype(jnp.float32)

    if n_full_groups == 0:
        partial = jnp.zeros(acc_ref.shape, jnp.float32)
    elif n_full_groups == 1:
        partial = load(0)
    else:
        partial = lax.fori_loop(
            1, n_full_groups,
            lambda j, p: p + load(j),
            load(0),
            unroll=min(unroll, max(1, n_full_groups - 1)),
        )

    if tail_rows:
        v = load(n_full_groups)
        row = lax.broadcasted_iota(jnp.int32, v.shape, 1)
        partial = partial + jnp.where(row < tail_rows, v, 0.0)

    acc_ref[...] += partial


def _token_avg_pool_kernel(x_ref, o_ref, acc_ref, *,
                           total_t, t_tile, group, num_t, unroll):
    """Grid = (batch_blocks, e_blocks, token_blocks); token axis is the reduction."""
    k = pl.program_id(2)

    @pl.when(k == 0)
    def _init():
        acc_ref[...] = jnp.zeros_like(acc_ref)

    groups_per_tile = t_tile // group
    rem = total_t - (num_t - 1) * t_tile      # valid rows in the last token tile
    has_tail = rem != t_tile

    if not has_tail:
        _accumulate(x_ref, acc_ref, n_full_groups=groups_per_tile, group=group,
                    tail_rows=0, unroll=unroll)
    else:
        @pl.when(k < num_t - 1)
        def _fast():       # unmasked path for all but the last token tile
            _accumulate(x_ref, acc_ref, n_full_groups=groups_per_tile, group=group,
                        tail_rows=0, unroll=unroll)

        @pl.when(k == num_t - 1)
        def _tail():       # masked path, only on the last tile, only the ragged group
            _accumulate(x_ref, acc_ref, n_full_groups=rem // group, group=group,
                        tail_rows=rem % group, unroll=unroll)

    @pl.when(k == num_t - 1)
    def _finalize():
        s = jnp.sum(acc_ref[...], axis=1)                 # single XLU sublane reduce
        o_ref[...] = (s * (1.0 / total_t)).astype(o_ref.dtype)


def _vmem_capacity_bytes() -> int:
    try:
        cap = int(pltpu.get_tpu_info().vmem_capacity_bytes)
        if cap > 0:
            return cap
    except Exception:
        pass
    return 64 * 1024 * 1024     # conservative (v7x) fallback


def token_avg_pool(x: jax.Array, *,
                   max_t_tile: int = 8192,
                   min_block_bytes: int = 1 << 20,
                   unroll: int = 8) -> jax.Array:
    """x: (N, T, E) -> (N, E), mean over the token dim T (torch x.mean(dim=1))."""
    N, T, E = x.shape
    itemsize = jnp.dtype(x.dtype).itemsize

    # Generation-aware VMEM budget (96 MiB limit on 128 MiB parts, 48 MiB on v7x).
    vmem_cap = _vmem_capacity_bytes()
    vmem_limit = (vmem_cap * 3) // 4
    per_buffer = vmem_limit // 4          # input block is double-buffered

    # ---- E (lane) tile: bounds vreg pressure / block size for large E. ----
    if E > 256 and E % 256 == 0:
        e_tile = 256
    elif E > 256 and E % 128 == 0:
        e_tile = 128
    else:
        e_tile = E                        # small E, or non-multiple-of-128 (full dim)
    num_e = pl.cdiv(E, e_tile)

    # ---- batch tile: >=8 sublanes for dense output stores; NO batch padding. ----
    bn = N if N <= 8 else 8

    # ---- token tile: multiple of 8, sized against the per-buffer budget. ----
    if T >= 8:
        rows = max(8, per_buffer // max(1, bn * e_tile * itemsize))
        t_tile = min(T, max_t_tile, rows)
        t_tile = max(8, (t_tile // 8) * 8)
    else:
        t_tile = T
    group = 8 if t_tile % 8 == 0 else t_tile
    num_t = pl.cdiv(T, t_tile)

    # ---- grow bn for small-T shapes so each DMA'd block is >= ~1 MiB, keeping
    #      >=2 batch blocks when N >= 16 (v7x megacore) and within budget. ----
    if N > 8:
        bn_cap = max(8, ((N - 1) // 8) * 8) if N >= 16 else 8
        bn_cap = min(bn_cap, 128)
        while (bn + 8 <= bn_cap
               and bn * t_tile * e_tile * itemsize < min_block_bytes
               and (bn + 8) * t_tile * e_tile * itemsize <= per_buffer):
            bn += 8
        # Balance block sizes across the (unchanged) number of batch blocks.
        num_b = pl.cdiv(N, bn)
        bn = min(bn, max(8, ((pl.cdiv(N, num_b) + 7) // 8) * 8))
    num_b = pl.cdiv(N, bn)

    kernel = functools.partial(
        _token_avg_pool_kernel,
        total_t=T, t_tile=t_tile, group=group, num_t=num_t, unroll=unroll,
    )

    return pl.pallas_call(
        kernel,
        out_shape=jax.ShapeDtypeStruct((N, E), x.dtype),
        grid_spec=pltpu.PrefetchScalarGridSpec(
            num_scalar_prefetch=0,
            grid=(num_b, num_e, num_t),                 # reduction (token) axis last
            in_specs=[pl.BlockSpec((bn, t_tile, e_tile),
                                   lambda i, j, k: (i, k, j))],
            out_specs=pl.BlockSpec((bn, e_tile), lambda i, j, k: (i, j)),
            scratch_shapes=[pltpu.VMEM((bn, group, e_tile), jnp.float32)],
        ),
        compiler_params=pltpu.CompilerParams(
            dimension_semantics=("parallel", "parallel", "arbitrary"),
            vmem_limit_bytes=int(vmem_limit),
        ),
    )(x)


if __name__ == "__main__":
    key = jax.random.PRNGKey(0)

    # --- Test 1: small shapes from the module docstring (N=2, T=8, E=32), f32 ---
    k1, k2, k3 = jax.random.split(key, 3)
    x1 = jax.random.normal(k1, (2, 8, 32), dtype=jnp.float32)
    out1 = token_avg_pool(x1)
    jax.block_until_ready(out1)
    ref1 = jnp.mean(x1, axis=1)
    assert out1.shape == (2, 32), out1.shape
    assert jnp.allclose(out1, ref1, atol=1e-5, rtol=1e-5), "mismatch vs reference (test 1)"

    # --- Test 2: bf16, N=16 (two batch blocks), T=20 exercises the gated tail-mask ---
    x2 = jax.random.normal(k2, (16, 20, 128), dtype=jnp.bfloat16)
    out2 = token_avg_pool(x2)
    jax.block_until_ready(out2)
    ref2 = jnp.mean(x2.astype(jnp.float32), axis=1)
    assert out2.shape == (16, 128), out2.shape
    assert out2.dtype == jnp.bfloat16
    assert jnp.allclose(out2.astype(jnp.float32), ref2, atol=2e-2), "mismatch vs reference (test 2)"

    # --- Test 3: N=12 exercises the pad-free ragged-batch path (OOB rows dropped) ---
    x3 = jax.random.normal(k3, (12, 16, 128), dtype=jnp.float32)
    out3 = token_avg_pool(x3)
    jax.block_until_ready(out3)
    ref3 = jnp.mean(x3, axis=1)
    assert out3.shape == (12, 128), out3.shape
    assert jnp.allclose(out3, ref3, atol=1e-5, rtol=1e-5), "mismatch vs reference (test 3)"

    print("KERNEL_OK")
</pallas_src>

<mosaic_0001>
module attributes {stable_mosaic.version = 11 : i64} {
  func.func @_token_avg_pool_kernel(%arg0: i32, %arg1: i32, %arg2: i32, %arg3: memref<2x8x32xf32, #tpu.memory_space<vmem>>, %arg4: memref<2x32xf32, #tpu.memory_space<vmem>>, %arg5: memref<2x8x32xf32, #tpu.memory_space<vmem>>) attributes {dimension_semantics = [#tpu.dimension_semantics<parallel>, #tpu.dimension_semantics<parallel>, #tpu.dimension_semantics<arbitrary>], iteration_bounds = array<i64: 1, 1, 1>, scalar_prefetch = 0 : i64, scratch_operands = 1 : i64, tpu.core_type = #tpu.core_type<tc>, window_params = [{transform_indices = @transform_0, window_bounds = array<i64: 2, 8, 32>}, {transform_indices = @transform_1, window_bounds = array<i64: 2, 32>}]} {
    %c0_i32 = arith.constant 0 : i32
    %0 = arith.cmpi eq, %arg2, %c0_i32 : i32
    %1 = arith.extui %0 : i1 to i32
    %c0_i32_0 = arith.constant 0 : i32
    %2 = arith.cmpi ne, %1, %c0_i32_0 : i32
    scf.if %2 {
      %cst = arith.constant 0.000000e+00 : f32
      %12 = vector.broadcast %cst : f32 to vector<2x8x32xf32>
      %c0_11 = arith.constant 0 : index
      %c0_12 = arith.constant 0 : index
      %c0_13 = arith.constant 0 : index
      %13 = vector.load %arg5[%c0_11, %c0_12, %c0_13] : memref<2x8x32xf32, #tpu.memory_space<vmem>>, vector<2x8x32xf32>
      tpu.vector_store %arg5[%c0_11, %c0_12, %c0_13], %12 {strides = array<i32>} : memref<2x8x32xf32, #tpu.memory_space<vmem>>, vector<2x8x32xf32>,
    } else {
    }
    %c0_i32_1 = arith.constant 0 : i32
    %3 = tpu.assume_multiple %c0_i32_1, 8 : i32
    %c0 = arith.constant 0 : index
    %4 = arith.index_cast %3 : i32 to index
    %c0_2 = arith.constant 0 : index
    %5 = vector.load %arg3[%c0, %4, %c0_2] : memref<2x8x32xf32, #tpu.memory_space<vmem>>, vector<2x8x32xf32>
    %c0_3 = arith.constant 0 : index
    %c0_4 = arith.constant 0 : index
    %c0_5 = arith.constant 0 : index
    %6 = vector.load %arg5[%c0_3, %c0_4, %c0_5] : memref<2x8x32xf32, #tpu.memory_space<vmem>>, vector<2x8x32xf32>
    %7 = arith.addf %6, %5 : vector<2x8x32xf32>
    %c0_6 = arith.constant 0 : index
    %c0_7 = arith.constant 0 : index
    %c0_8 = arith.constant 0 : index
    %8 = vector.load %arg5[%c0_6, %c0_7, %c0_8] : memref<2x8x32xf32, #tpu.memory_space<vmem>>, vector<2x8x32xf32>
    tpu.vector_store %arg5[%c0_6, %c0_7, %c0_8], %7 {strides = array<i32>} : memref<2x8x32xf32, #tpu.memory_space<vmem>>, vector<2x8x32xf32>,
    %c0_i32_9 = arith.constant 0 : i32
    %9 = arith.cmpi eq, %arg2, %c0_i32_9 : i32
    %10 = arith.extui %9 : i1 to i32
    %c0_i32_10 = arith.constant 0 : i32
    %11 = arith.cmpi ne, %10, %c0_i32_10 : i32
    scf.if %11 {
      %c0_11 = arith.constant 0 : index
      %c0_12 = arith.constant 0 : index
      %c0_13 = arith.constant 0 : index
      %12 = vector.load %arg5[%c0_11, %c0_12, %c0_13] : memref<2x8x32xf32, #tpu.memory_space<vmem>>, vector<2x8x32xf32>
      %cst = arith.constant dense<0.000000e+00> : vector<2x32xf32>
      %13 = vector.multi_reduction <add>, %12, %cst [1] : vector<2x8x32xf32> to vector<2x32xf32>
      %cst_14 = arith.constant 1.250000e-01 : f32
      %14 = vector.broadcast %cst_14 : f32 to vector<2x32xf32>
      %15 = arith.mulf %13, %14 : vector<2x32xf32>
      %c0_15 = arith.constant 0 : index
      %c0_16 = arith.constant 0 : index
      %16 = vector.load %arg4[%c0_15, %c0_16] : memref<2x32xf32, #tpu.memory_space<vmem>>, vector<2x32xf32>
      tpu.vector_store %arg4[%c0_15, %c0_16], %15 {strides = array<i32>} : memref<2x32xf32, #tpu.memory_space<vmem>>, vector<2x32xf32>,
    } else {
    }
    return
  }
  func.func @transform_0(%arg0: i32, %arg1: i32, %arg2: i32) -> (i32, i32, i32) {
    %c0_i32 = arith.constant 0 : i32
    return %arg0, %arg2, %arg1 : i32, i32, i32
  }
  func.func @transform_1(%arg0: i32, %arg1: i32, %arg2: i32) -> (i32, i32) {
    %c0_i32 = arith.constant 0 : i32
    return %arg0, %arg1 : i32, i32
  }
}

</mosaic_0001>

<bundles_post_ra>
// kernel: tpu_custom_call.1
= control target key start
LH: loop header
LB: loop body
LE: loop exit
PB: predicated region body
PF: predicated region fallthrough
CT: control target
= control target key end

     0   :  { %6 = vsyncpa [#allocation4], 0  ;;  %s152_s0 = inlined_call_operand.hbm [shape: f32[2,8,32], index: 0, kind: input, shape index: {}]   ;;  %s153_s1 = inlined_call_operand.hbm [shape: f32[2,32], index: 1, kind: output, shape index: {}]  }
   0x1   :  { %7 = vsyncpa [#allocation5], 0  ;;  %s131_s6 = smov [#allocation3]  }
   0x2   :  { %s13_s7 = sshll.u32 %s131_s6, 4  ;;  %s14_s7 = int_to_ptr.vmem [resolvable:$true] %s13_s7 }
   0x3   :  { %s95_s8 = scalar_lea.vmem %s14_s7, 256  ;;  %p100_p1 = scmp.lt.s32.totalorder %s14_s7, %s14_s7 }
   0x4   :  { %p96_p0 = scmp.ne.s32.totalorder %s14_s7, %s95_s8  ;;  %p101_p2 = scmp.lt.s32.totalorder %s95_s8, %s95_s8 }
   0x6   :  { %p102_p3 = por %p101_p2, %p100_p1 }
   0x8   :  { %p103_p4 = pnand %p102_p3, %p96_p0 }
   0xa   :  { %106 = shalt.err (!%p103_p4)
}
   0xb   :  { %s132_s9 = smov 128   ;;  %s133_s10 = smov 8  }
   0xc   :  { %19 = dma.hbm_to_vmem [thread:$0]  %s152_s0, 256, %s14_s7, [#allocation4], %s132_s9, %s132_s9, %s133_s10  }
   0xd   :  { %127 = dma.done.wait [#allocation4], 256  }
   0xe   :  { %128 = vsyncadd [#allocation4], 4294967040  ;;  %vm27_vm0 = vcmask 261120   ;;  %v134_v0 = vmov 0.0   ;;  %v30_v1 = vld [vmem:[#allocation3] sm:$0xff]  ;;  %v31_v2 = vld [vmem:[#allocation3 + $0x8] sm:$0xff] }
   0xf   :  { %28 = vst.msk [vmem:[#allocation2] sm:$0xff] %vm27_vm0, %v134_v0  ;;  %29 = vst.msk [vmem:[#allocation2 + $0x8] sm:$0xff] %vm27_vm0, %v134_v0  ;;  %s135_s0 = smov [#allocation6]   ;;  %vm62_vm1 = vcmask 1041409   ;;  %vm65_vm2 = vcmask 254976  }
  0x10   :  { %s73_s13 = sshll.u32 %s135_s0, 4  ;;  %s74_s13 = int_to_ptr.vmem [resolvable:$true] %s73_s13 }
  0x11   :  { %s107_s14 = scalar_lea.vmem %s74_s13, 32  ;;  %p112_p6 = scmp.lt.s32.totalorder %s74_s13, %s74_s13 }
  0x12   :  { %p108_p5 = scmp.ne.s32.totalorder %s74_s13, %s107_s14  ;;  %p113_p7 = scmp.lt.s32.totalorder %s107_s14, %s107_s14 }
  0x14   :  { %p114_p8 = por %p113_p7, %p112_p6 }
  0x16   :  { %v32_v3 = vld [vmem:[#allocation2] sm:$0xff]  ;;  %v33_v4 = vld [vmem:[#allocation2 + $0x8] sm:$0xff]  ;;  %p115_p9 = pnand %p114_p8, %p108_p5 }
  0x17   :  { %v34_v5 = vadd.f32 %v32_v3, %v30_v1  ;;  %v35_v6 = vadd.f32 %v33_v4, %v31_v2 }
  0x19   :  { %37 = vst.msk [vmem:[#allocation2] sm:$0xff] %vm27_vm0, %v34_v5  ;;  %38 = vst.msk [vmem:[#allocation2 + $0x8] sm:$0xff] %vm27_vm0, %v35_v6 }
  0x20   :  { %v42_v7 = vld [vmem:[#allocation2] sm:$0xff]  ;;  %v43_v8 = vld [vmem:[#allocation2 + $0x8] sm:$0xff] }
  0x21   :  { %v44_v9 = vsel %vm27_vm0, %v42_v7, 0.0  ;;  %v51_v10 = vsel %vm27_vm0, %v43_v8, 0.0 }
  0x22   :  { %v45_v11 = vrot.slane %v44_v9, 4  ;;  %v52_v12 = vrot.slane %v51_v10, 4 }
  0x24   :  { %v46_v13 = vadd.f32 %v45_v11, %v44_v9  ;;  %v53_v14 = vadd.f32 %v52_v12, %v51_v10 }
  0x26   :  { %v47_v15 = vrot.slane %v46_v13, 2  ;;  %v54_v16 = vrot.slane %v53_v14, 2 }
  0x28   :  { %v48_v17 = vadd.f32 %v47_v15, %v46_v13  ;;  %v55_v18 = vadd.f32 %v54_v16, %v53_v14 }
  0x2a   :  { %v49_v19 = vrot.slane %v48_v17, 1  ;;  %v56_v20 = vrot.slane %v55_v18, 1 }
  0x2c   :  { %v50_v21 = vadd.f32 %v49_v19, %v48_v17  ;;  %v57_v22 = vadd.f32 %v56_v20, %v55_v18 }
  0x2e   :  { %v58_v23 = vmul.f32 0.125, %v50_v21  ;;  %v59_v24 = vmul.f32 0.125, %v57_v22 }
  0x30   :  { %v63_v25 = vsel %vm62_vm1, %v59_v24, %v58_v23 }
  0x31   :  { %66 = vst.msk [vmem:[#allocation6] sm:$0x3] %vm65_vm2, %v63_v25 }
  0x32   :  { %118 = shalt.err (!%p115_p9)
}
  0x33   :  { %76 = dma.vmem_to_hbm [thread:$0]  %s74_s13, 32, %s153_s1, [#allocation5]  }
  0x34   :  { %129 = dma.done.wait [#allocation5], 32  }
  0x35   :  { %130 = vsyncadd [#allocation5], 4294967264 }
  0x36   :  { %80 = vsyncpa [#allocation4], 1 }
  0x37   :  { %81 = vsyncpa [#allocation5], 1 }

</bundles_post_ra>
